<compile_context>
chip_gen: v7x
topology: tpu7x:2x2x1
jax: 0.10.0
libtpu: 0.0.40
codegen_flags: <defaults>
</compile_context>

<pallas_src>
import functools
import math

import jax
import jax.numpy as jnp
from jax import lax
from jax.experimental import pallas as pl
from jax.experimental.pallas import tpu as pltpu


def _round_up(x, m):
    return ((x + m - 1) // m) * m


def _pick_tile(dim, candidates):
    """Largest candidate tile that evenly divides `dim` (None if none does)."""
    for c in candidates:
        if c <= dim and dim % c == 0:
            return c
    return None


# =============================================================================
# Linear (+ bias + optional ReLU) : tiled MXU matmul, (K, N) weights
# =============================================================================
_TK_CANDS = (4096, 3584, 3072, 2816, 2560, 2048, 1792, 1536, 1280, 1024,
             896, 768, 640, 512, 384, 256, 128)
_TN_CANDS = (512, 384, 256, 128)


def _fc_kernel(x_ref, w_ref, b_ref, o_ref, *, apply_relu):
    k = pl.program_id(2)

    @pl.when(k == 0)
    def _():
        o_ref[...] = jnp.zeros_like(o_ref)

    # x: (TM, TK) bf16, w: (TK, TN) bf16 -> canonical contraction into resident f32 block.
    o_ref[...] += jnp.dot(x_ref[...], w_ref[...], preferred_element_type=jnp.float32)

    @pl.when(k == pl.num_programs(2) - 1)
    def _():
        r = o_ref[...] + b_ref[...]            # f32 epilogue
        if apply_relu:
            r = jnp.maximum(r, 0.0)
        o_ref[...] = r


def linear_bias_act(x, w, b, apply_relu):
    """y = x @ w + b.  x: (M, K); w: (K, N) bf16 (pre-transposed); b: (1, N) f32."""
    x = x.astype(w.dtype)
    m, kdim = x.shape
    n = w.shape[1]

    tm = m if m <= 256 else 256
    if m % tm:
        x = jnp.pad(x, ((0, tm - m % tm), (0, 0)))
    mp = x.shape[0]

    tn = _pick_tile(n, _TN_CANDS) or n
    tk = _pick_tile(kdim, _TK_CANDS)
    if tk is None:  # fallback: minimal 128-aligned padding of the reduction dim
        nk = pl.cdiv(kdim, 512)
        tk = _round_up(-(-kdim // nk), 128)
        kpad = nk * tk
        x = jnp.pad(x, ((0, 0), (0, kpad - kdim)))
        w = jnp.pad(w, ((0, kpad - kdim), (0, 0)))
        kdim = kpad

    grid = (mp // tm, n // tn, kdim // tk)
    out = pl.pallas_call(
        functools.partial(_fc_kernel, apply_relu=apply_relu),
        out_shape=jax.ShapeDtypeStruct((mp, n), jnp.float32),
        grid_spec=pltpu.PrefetchScalarGridSpec(
            num_scalar_prefetch=0,
            grid=grid,
            in_specs=[
                pl.BlockSpec((tm, tk), lambda i, j, k: (i, k)),
                pl.BlockSpec((tk, tn), lambda i, j, k: (k, j)),
                pl.BlockSpec((1, tn), lambda i, j, k: (0, j)),
            ],
            out_specs=pl.BlockSpec((tm, tn), lambda i, j, k: (i, j)),
        ),
        compiler_params=pltpu.CompilerParams(
            dimension_semantics=("parallel", "parallel", "arbitrary"),
            vmem_limit_bytes=32 * 1024 * 1024,
        ),
    )(x, w, b)
    return out[:m] if mp != m else out


# =============================================================================
# Conv 3x3 (pad=1) + bias + ReLU (+ optional fused MaxPool2x2)
#   * double-buffered halo DMA, single K=9*Cin MXU matmul per row tile
# =============================================================================
_CONV_VMEM_BUDGET = 40 * 1024 * 1024   # estimate (incl. transient copies) must fit here
_CONV_VMEM_LIMIT = 56 * 1024 * 1024    # scoped-VMEM limit passed to the compiler


def _conv_tile_cost(th, w, cin, cout, fuse_pool):
    """Conservative per-step VMEM estimate in bytes (transient copies triple-counted)."""
    halo = 2 * (th + 2) * (w + 2) * cin * 2          # double-buffered halo slabs (bf16)
    patches = th * w * 9 * cin * 2                   # im2col matrix (bf16)
    acc = th * w * cout * 4                          # f32 matmul result
    oelems = (th // 2) * (w // 2) if fuse_pool else th * w
    out = 2 * oelems * cout * 2                      # double-buffered output block
    wgt = 2 * 9 * cin * cout * 2                     # double-buffered flat weights
    return halo + 3 * patches + acc + out + wgt


def _pick_conv_row_tile(h, w, cin, cout, fuse_pool):
    best = None
    for d in range(1, h + 1):
        if h % d:
            continue
        if fuse_pool and d % 2:
            continue
        if _conv_tile_cost(d, w, cin, cout, fuse_pool) <= _CONV_VMEM_BUDGET:
            best = d
    if best is None:
        best = 2 if fuse_pool else 1
    return best


def _conv3x3_relu_kernel(xp_hbm, w_ref, b_ref, o_ref, xbuf, sem, *, fuse_pool):
    th = xbuf.shape[1] - 2
    wd = xbuf.shape[2] - 2
    cin = xbuf.shape[3]
    cout = o_ref.shape[3]

    bi = pl.program_id(0)            # batch element ('parallel')
    ti = pl.program_id(1)            # row tile ('arbitrary' -> sequential on a core)
    n_tiles = pl.num_programs(1)
    slot = lax.rem(ti, 2)
    nslot = 1 - slot

    def start_fetch(tile_idx, s):
        pltpu.make_async_copy(
            xp_hbm.at[bi, pl.ds(tile_idx * th, th + 2)],
            xbuf.at[s], sem.at[s]).start()

    # Prime this image's first halo; every other tile's halo was prefetched one step ago.
    @pl.when(ti == 0)
    def _():
        start_fetch(0, 0)

    # Prefetch the next row tile's halo into the other slot (overlaps this tile's compute).
    @pl.when(ti + 1 < n_tiles)
    def _():
        start_fetch(ti + 1, nslot)

    pltpu.make_async_copy(
        xp_hbm.at[bi, pl.ds(ti * th, th + 2)],
        xbuf.at[slot], sem.at[slot]).wait()

    # In-VMEM im2col: (th*wd, 9*cin) patch matrix -> ONE MXU matmul with K = 9*cin.
    slab = xbuf[slot]                                                 # (th+2, wd+2, cin)
    parts = [slab[dy:dy + th, dx:dx + wd, :]
             for dy in range(3) for dx in range(3)]
    patches = jnp.concatenate(parts, axis=-1).reshape(th * wd, 9 * cin)
    acc = jnp.dot(patches, w_ref[...], preferred_element_type=jnp.float32)
    r = jnp.maximum(acc + b_ref[...], 0.0)                            # f32 epilogue

    if fuse_pool:                                                     # fused MaxPool2d(2,2)
        r = jnp.max(r.reshape(th // 2, 2, wd, cout), axis=1)
        r = jnp.max(r.reshape(th // 2, wd // 2, 2, cout), axis=2)
        o_ref[...] = r.reshape(1, th // 2, wd // 2, cout).astype(o_ref.dtype)
    else:
        o_ref[...] = r.reshape(1, th, wd, cout).astype(o_ref.dtype)


def conv3x3_relu(x, w_flat, b_row, fuse_pool=False):
    """x: (N, H, W, Cin) bf16 NHWC; w_flat: (9*Cin, Cout) bf16; b_row: (1, Cout) f32."""
    n, h, wd, cin = x.shape
    cout = w_flat.shape[1]
    xp = jnp.pad(x, ((0, 0), (1, 1), (1, 1), (0, 0)))  # spatial zero pad (HBM, 1x copy)
    th = _pick_conv_row_tile(h, wd, cin, cout, fuse_pool)
    if fuse_pool:
        ho, wo, tho = h // 2, wd // 2, th // 2
    else:
        ho, wo, tho = h, wd, th
    return pl.pallas_call(
        functools.partial(_conv3x3_relu_kernel, fuse_pool=fuse_pool),
        out_shape=jax.ShapeDtypeStruct((n, ho, wo, cout), jnp.bfloat16),
        grid_spec=pltpu.PrefetchScalarGridSpec(
            num_scalar_prefetch=0,
            grid=(n, h // th),
            in_specs=[
                pl.BlockSpec(memory_space=pl.ANY),                       # padded input (manual DMA)
                pl.BlockSpec((9 * cin, cout), lambda b, i: (0, 0)),       # flat 3x3 weights
                pl.BlockSpec((1, cout), lambda b, i: (0, 0)),
            ],
            out_specs=pl.BlockSpec((1, tho, wo, cout), lambda b, i: (b, i, 0, 0)),
            scratch_shapes=[
                pltpu.VMEM((2, th + 2, wd + 2, cin), x.dtype),            # double-buffered halo
                pltpu.SemaphoreType.DMA((2,)),
            ]),
        compiler_params=pltpu.CompilerParams(
            dimension_semantics=("parallel", "arbitrary"),
            vmem_limit_bytes=_CONV_VMEM_LIMIT,
        ),
    )(xp, w_flat, b_row)


def conv3x3_relu_small_cin(x, w_flat, b_row):
    """First-layer (Cin=3) special case: JAX im2col (tiny) + tiled matmul kernel, K=27."""
    n, h, wd, cin = x.shape
    cout = w_flat.shape[1]
    xp = jnp.pad(x, ((0, 0), (1, 1), (1, 1), (0, 0)))
    parts = [xp[:, dy:dy + h, dx:dx + wd, :] for dy in range(3) for dx in range(3)]
    pm = jnp.concatenate(parts, axis=-1).reshape(n * h * wd, 9 * cin)
    y = linear_bias_act(pm, w_flat, b_row, apply_relu=True)
    return y.reshape(n, h, wd, cout).astype(jnp.bfloat16)


# =============================================================================
# MaxPool2d(2, 2) : standalone fallback (only used when it cannot be fused into a conv)
# =============================================================================
def _maxpool2x2_kernel(x_ref, o_ref):
    _, th2, w, c = x_ref.shape
    tr, wo = th2 // 2, w // 2
    x = x_ref[...].reshape(tr, 2, w, c)
    hmax = jnp.max(x, axis=1)                                   # pool adjacent rows
    o_ref[...] = jnp.max(hmax.reshape(tr, wo, 2, c), axis=2).reshape(1, tr, wo, c)


def _pick_pool_row_tile(ho, w, c):
    budget = 1 << 20
    cap = max(1, budget // max(1, 2 * w * c))
    best = 1
    for d in range(1, ho + 1):
        if ho % d == 0 and d <= cap:
            best = d
    return best


def maxpool2x2(x):
    n, h, w, c = x.shape
    ho, wo = h // 2, w // 2
    tr = _pick_pool_row_tile(ho, w, c)
    return pl.pallas_call(
        _maxpool2x2_kernel,
        out_shape=jax.ShapeDtypeStruct((n, ho, wo, c), x.dtype),
        grid_spec=pltpu.PrefetchScalarGridSpec(
            num_scalar_prefetch=0,
            grid=(n, ho // tr),
            in_specs=[pl.BlockSpec((1, 2 * tr, w, c), lambda b, i: (b, i, 0, 0))],
            out_specs=pl.BlockSpec((1, tr, wo, c), lambda b, i: (b, i, 0, 0)),
        ),
        compiler_params=pltpu.CompilerParams(
            dimension_semantics=("parallel", "parallel"),
            vmem_limit_bytes=32 * 1024 * 1024,
        ),
    )(x)


# =============================================================================
# AdaptiveAvgPool2d((7,7)) -- tiny, plain-JAX glue with PyTorch bin semantics
# =============================================================================
def adaptive_avg_pool2d(x, out_h=7, out_w=7):
    _, h, w, _ = x.shape
    rows = []
    for i in range(out_h):
        h0 = (i * h) // out_h
        h1 = -(-((i + 1) * h) // out_h)
        cols = []
        for j in range(out_w):
            w0 = (j * w) // out_w
            w1 = -(-((j + 1) * w) // out_w)
            cols.append(jnp.mean(x[:, h0:h1, w0:w1, :], axis=(1, 2)))
        rows.append(jnp.stack(cols, axis=1))
    return jnp.stack(rows, axis=1)  # (N, out_h, out_w, C)


# =============================================================================
# Parameters / model
# =============================================================================
CFGS = {
    "vgg16": [64, 64, "M", 128, 128, "M", 256, 256, 256, "M",
              512, 512, 512, "M", 512, 512, 512, "M"],
    "vgg19": [64, 64, "M", 128, 128, "M", 256, 256, 256, 256, "M",
              512, 512, 512, 512, "M", 512, 512, 512, 512, "M"],
}


def init_vgg_params(key, model_name="vgg16", num_classes=1000):
    """PyTorch-layout f32 parameters (conv: (Cout,Cin,3,3), fc: (out,in))."""
    cfg = CFGS[model_name]
    convs = []
    in_c = 3
    for v in cfg:
        if v == "M":
            continue
        key, k1 = jax.random.split(key)
        fan_in, fan_out = in_c * 9, v * 9
        limit = math.sqrt(6.0 / (fan_in + fan_out))  # xavier-uniform-like
        w = jax.random.uniform(k1, (v, in_c, 3, 3), jnp.float32, -limit, limit)
        convs.append((w, jnp.zeros((v,), jnp.float32)))
        in_c = v
    fcs = []
    for din, dout in [(512 * 7 * 7, 4096), (4096, 4096), (4096, num_classes)]:
        key, k1 = jax.random.split(key)
        limit = math.sqrt(6.0 / (din + dout))
        w = jax.random.uniform(k1, (dout, din), jnp.float32, -limit, limit)
        fcs.append((w, jnp.zeros((dout,), jnp.float32)))
    return cfg, convs, fcs


def prepare_params(conv_params, fc_params):
    """One-time conversion to kernel-friendly layouts/dtypes (done outside the forward)."""
    convs = []
    for w, b in conv_params:
        cout, cin = w.shape[0], w.shape[1]
        # (Cout, Cin, 3, 3) -> (3, 3, Cin, Cout) -> flat (9*Cin, Cout), bf16.
        wk = jnp.transpose(w, (2, 3, 1, 0)).reshape(9 * cin, cout).astype(jnp.bfloat16)
        convs.append((wk, b.reshape(1, -1).astype(jnp.float32)))
    fcs = []
    for w, b in fc_params:
        nout = w.shape[0]
        n_pad = _round_up(nout, 128)                               # lane-dense output tiles
        wt = jnp.transpose(w, (1, 0))                              # (K, N): canonical matmul RHS
        if n_pad != nout:
            wt = jnp.pad(wt, ((0, 0), (0, n_pad - nout)))
            b = jnp.pad(b, (0, n_pad - nout))
        fcs.append((wt.astype(jnp.bfloat16),
                    b.reshape(1, -1).astype(jnp.float32),
                    nout))
    return convs, fcs


def vgg_forward(x_nchw, cfg, conv_params, fc_params):
    x = jnp.transpose(x_nchw, (0, 2, 3, 1)).astype(jnp.bfloat16)   # NCHW -> NHWC bf16
    ci = 0
    i = 0
    while i < len(cfg):
        v = cfg[i]
        if v == "M":
            x = maxpool2x2(x)
            i += 1
            continue
        w, b = conv_params[ci]
        ci += 1
        cin = x.shape[-1]
        next_is_pool = (i + 1 < len(cfg)) and (cfg[i + 1] == "M")
        if cin < 16:
            # First layer (Cin=3): JAX im2col + matmul kernel (the following 'M' -- if any
            # -- is handled by the standalone pool on the next loop iteration).
            x = conv3x3_relu_small_cin(x, w, b)
            i += 1
            continue
        can_fuse = next_is_pool and x.shape[1] % 2 == 0 and x.shape[2] % 2 == 0
        x = conv3x3_relu(x, w, b, fuse_pool=can_fuse)
        i += 2 if can_fuse else 1

    x = adaptive_avg_pool2d(x.astype(jnp.float32), 7, 7)
    n = x.shape[0]
    # torch.flatten(start_dim=1) on an NCHW tensor -> transpose back before flattening
    x = jnp.transpose(x, (0, 3, 1, 2)).reshape(n, -1)              # (N, 512*7*7)
    (w1, b1, n1), (w2, b2, n2), (w3, b3, n3) = fc_params
    x = linear_bias_act(x, w1, b1, apply_relu=True)[:, :n1]
    # TODO(synk): nn.Dropout(p=0.5) treated as identity (inference/eval semantics).
    x = linear_bias_act(x, w2, b2, apply_relu=True)[:, :n2]
    x = linear_bias_act(x, w3, b3, apply_relu=False)[:, :n3]
    return x


if __name__ == "__main__":
    key = jax.random.PRNGKey(0)
    k_params, k_x = jax.random.split(key)
    num_classes = 1000
    cfg, conv_raw, fc_raw = init_vgg_params(k_params, "vgg16", num_classes)
    conv_p, fc_p = prepare_params(conv_raw, fc_raw)
    x = jax.random.normal(k_x, (2, 3, 32, 32), jnp.float32)        # small NCHW input
    out = vgg_forward(x, cfg, conv_p, fc_p)
    out = jax.block_until_ready(out)
    assert out.shape == (2, num_classes) and out.dtype == jnp.float32
    print("KERNEL_OK")
</pallas_src>

<mosaic_0001>
module attributes {stable_mosaic.version = 11 : i64} {
  func.func @_fc_kernel(%arg0: i32, %arg1: i32, %arg2: i32, %arg3: memref<256x128xbf16, #tpu.memory_space<vmem>>, %arg4: memref<128x64xbf16, #tpu.memory_space<vmem>>, %arg5: memref<1x64xf32, #tpu.memory_space<vmem>>, %arg6: memref<256x64xf32, #tpu.memory_space<vmem>>) attributes {dimension_semantics = [#tpu.dimension_semantics<parallel>, #tpu.dimension_semantics<parallel>, #tpu.dimension_semantics<arbitrary>], iteration_bounds = array<i64: 8, 1, 1>, scalar_prefetch = 0 : i64, scratch_operands = 0 : i64, tpu.core_type = #tpu.core_type<tc>, window_params = [{transform_indices = @transform_0, window_bounds = array<i64: 256, 128>}, {transform_indices = @transform_1, window_bounds = array<i64: 128, 64>}, {transform_indices = @transform_2, window_bounds = array<i64: 1, 64>}, {transform_indices = @transform_3, window_bounds = array<i64: 256, 64>}]} {
    %c0_i32 = arith.constant 0 : i32
    %0 = arith.cmpi eq, %arg2, %c0_i32 : i32
    %1 = arith.extui %0 : i1 to i32
    %c0_i32_0 = arith.constant 0 : i32
    %2 = arith.cmpi ne, %1, %c0_i32_0 : i32
    scf.if %2 {
      %cst_10 = arith.constant 0.000000e+00 : f32
      %12 = vector.broadcast %cst_10 : f32 to vector<256x64xf32>
      %c0_11 = arith.constant 0 : index
      %c0_12 = arith.constant 0 : index
      %13 = vector.load %arg6[%c0_11, %c0_12] : memref<256x64xf32, #tpu.memory_space<vmem>>, vector<256x64xf32>
      tpu.vector_store %arg6[%c0_11, %c0_12], %12 {strides = array<i32>} : memref<256x64xf32, #tpu.memory_space<vmem>>, vector<256x64xf32>,
    } else {
    }
    %c0 = arith.constant 0 : index
    %c0_1 = arith.constant 0 : index
    %3 = vector.load %arg6[%c0, %c0_1] : memref<256x64xf32, #tpu.memory_space<vmem>>, vector<256x64xf32>
    %c0_2 = arith.constant 0 : index
    %c0_3 = arith.constant 0 : index
    %4 = vector.load %arg3[%c0_2, %c0_3] : memref<256x128xbf16, #tpu.memory_space<vmem>>, vector<256x128xbf16>
    %c0_4 = arith.constant 0 : index
    %c0_5 = arith.constant 0 : index
    %5 = vector.load %arg4[%c0_4, %c0_5] : memref<128x64xbf16, #tpu.memory_space<vmem>>, vector<128x64xbf16>
    %cst = arith.constant dense<0.000000e+00> : vector<256x64xf32>
    %6 = tpu.matmul %4, %5, %cst {dimension_numbers = #tpu.dot_dimension_numbers<[1], [0], [0], [1], [0, 0, 1, 1], [], []>} : vector<256x128xbf16>, vector<128x64xbf16>, vector<256x64xf32> -> vector<256x64xf32>
    %7 = arith.addf %3, %6 : vector<256x64xf32>
    %c0_6 = arith.constant 0 : index
    %c0_7 = arith.constant 0 : index
    %8 = vector.load %arg6[%c0_6, %c0_7] : memref<256x64xf32, #tpu.memory_space<vmem>>, vector<256x64xf32>
    tpu.vector_store %arg6[%c0_6, %c0_7], %7 {strides = array<i32>} : memref<256x64xf32, #tpu.memory_space<vmem>>, vector<256x64xf32>,
    %c0_i32_8 = arith.constant 0 : i32
    %9 = arith.cmpi eq, %arg2, %c0_i32_8 : i32
    %10 = arith.extui %9 : i1 to i32
    %c0_i32_9 = arith.constant 0 : i32
    %11 = arith.cmpi ne, %10, %c0_i32_9 : i32
    scf.if %11 {
      %c0_10 = arith.constant 0 : index
      %c0_11 = arith.constant 0 : index
      %12 = vector.load %arg6[%c0_10, %c0_11] : memref<256x64xf32, #tpu.memory_space<vmem>>, vector<256x64xf32>
      %c0_12 = arith.constant 0 : index
      %c0_13 = arith.constant 0 : index
      %13 = vector.load %arg5[%c0_12, %c0_13] : memref<1x64xf32, #tpu.memory_space<vmem>>, vector<1x64xf32>
      %14 = vector.broadcast %13 : vector<1x64xf32> to vector<256x64xf32>
      %15 = arith.addf %12, %14 : vector<256x64xf32>
      %cst_14 = arith.constant 0.000000e+00 : f32
      %16 = vector.broadcast %cst_14 : f32 to vector<256x64xf32>
      %17 = arith.maximumf %15, %16 : vector<256x64xf32>
      %c0_15 = arith.constant 0 : index
      %c0_16 = arith.constant 0 : index
      %18 = vector.load %arg6[%c0_15, %c0_16] : memref<256x64xf32, #tpu.memory_space<vmem>>, vector<256x64xf32>
      tpu.vector_store %arg6[%c0_15, %c0_16], %17 {strides = array<i32>} : memref<256x64xf32, #tpu.memory_space<vmem>>, vector<256x64xf32>,
    } else {
    }
    return
  }
  func.func @transform_0(%arg0: i32, %arg1: i32, %arg2: i32) -> (i32, i32) {
    %c0_i32 = arith.constant 0 : i32
    return %arg0, %arg2 : i32, i32
  }
  func.func @transform_1(%arg0: i32, %arg1: i32, %arg2: i32) -> (i32, i32) {
    %c0_i32 = arith.constant 0 : i32
    return %arg2, %arg1 : i32, i32
  }
  func.func @transform_2(%arg0: i32, %arg1: i32, %arg2: i32) -> (i32, i32) {
    %c0_i32 = arith.constant 0 : i32
    %c0_i32_0 = arith.constant 0 : i32
    return %c0_i32, %arg1 : i32, i32
  }
  func.func @transform_3(%arg0: i32, %arg1: i32, %arg2: i32) -> (i32, i32) {
    %c0_i32 = arith.constant 0 : i32
    return %arg0, %arg1 : i32, i32
  }
}

</mosaic_0001>

<bundles_post_ra>
// kernel: tpu_custom_call.1
= control target key start
LH: loop header
LB: loop body
LE: loop exit
PB: predicated region body
PF: predicated region fallthrough
CT: control target
= control target key end

     0   :  { %8 = vsyncpa [#allocation3], 0  ;;  %s1794_s0 = inlined_call_operand.hbm [shape: bf16[2048,128], index: 0, kind: input, shape index: {}]   ;;  %s1795_s1 = inlined_call_operand.vmem [shape: bf16[128,64], index: 1, kind: input, shape index: {}]   ;;  %s1796_s2 = inlined_call_operand.vmem [shape: f32[1,64], index: 2, kind: input, shape index: {}]   ;;  %s1797_s3 = inlined_call_operand.vmem [shape: f32[2048,64], index: 3, kind: output, shape index: {}]  }
   0x1   :  { %10 = vsyncpa [#allocation3 + $0x1], 0  ;;  %s1334_s12 = smov 0   ;;  %s1336_s13 = smov 0  }
   0x2   :  { %s1338_s14 = smov 0   ;;  %s1340_s15 = smov 0  }
   0x3   :  { %s1342_s16 = smov 0   ;;  %s1344_s17 = smov 0  }
   0x4 LB: > { %s1017_s18 = sadd.s32 4294967295, %s1308_s17   ;;  %s35_s19 = sadd.s32 1, %s1304_s16  ;;  %s1308_s17 = sphi %s1344_s17, %s16_s17   ;;  %s1304_s16 = sphi %s1342_s16, %s1805_s16   ;;  %s1300_s15 = sphi %s1340_s15, %s1804_s15   ;;  %s1296_s14 = sphi %s1338_s14, %s1803_s14   ;;  %s1292_s13 = sphi %s1336_s13, %s1802_s13   ;;  %s1288_s12 = sphi %s1334_s12, %s1801_s12  }
   0x5   : > { %p37_p0 = scmp.ge.s32.totalorder %s35_s19, 8  ;;  %s44_s20 = sadd.s32 1, %s1296_s14 }
   0x6   : > { %p51_p1 = scmp.ne.s32.totalorder %s1296_s14, %s1292_s13  ;;  %p52_p2 = scmp.eq.s32.totalorder %s1308_s17, 0 }
   0x7   : > { %s1807_s19 = smov (%p37_p0, %s35_s19), 0  ;;  %p57_p4 = scmp.ne.s32.totalorder %s1292_s13, %s1288_s12 }
   0x8   : > { %p1370_p3 = por %p52_p2, %p51_p1  ;;  %s39_s22 = ssub.s32 %s1304_s16, %s1807_s19 }
   0x9   : > { %p58_p5 = scmp.eq.s32.totalorder %s1017_s18, 0  ;;  %p42_p6 = scmp.eq.s32.totalorder %s39_s22, 0 }
   0xa   : > { %p1152_p8 = scmp.lt.s32.totalorder %s1308_s17, 8  ;;  %s181_s25 = sand.u32 1, %s1296_s14  }
   0xb   : > { %p1377_p7 = por %p58_p5, %p57_p4  ;;  %s1057_s26 = sshll.u32 %s1304_s16, 11 }
   0xc   : > { %s1383_s24 = scalar_select %p42_p6, %s1296_s14, %s44_s20  }
   0xd   : > { %s1023_s27 = sshll.u32 %s181_s25, 7  ;;  %s1390_s30 = scalar_lea.hbm %s1794_s0, %s1057_s26 }
   0xe   : > { %s185_s4 = scalar_lea.vmem [#allocation2], %s1023_s27  ;;  %p1394_p9 = pnand %p1152_p8, %p1370_p3 }
   0xf   : > { %s193_s5 = sshll.u32 %s185_s4, 4  ;;  %s1400_s7 = scalar_lea.sflag [#allocation3], %s181_s25  ;;  %s1398_s5 = int_to_ptr.vmem [resolvable:$true] %s193_s5 }
  0x10   : > { %s1228_s8 = scalar_lea.hbm %s1390_s30, 2048  ;;  %p1230_p11 = pneg %p1394_p9 }
  0x11   : > { %p1229_p10 = scmp.ne.s32.totalorder %s1390_s30, %s1228_s8  ;;  %s1233_s11 = scalar_lea.hbm %s1794_s0, 16384 }
  0x12   : > { %p1234_p0 = scmp.lt.u32.totalorder %s1390_s30, %s1794_s0  ;;  %p1235_p1 = scmp.lt.u32.totalorder %s1233_s11, %s1228_s8 }
  0x13   : > { %p1231_p12 = pnand %p1230_p11, %p1229_p10  ;;  %p1237_p3 = scmp.lt.u32.totalorder %s1228_s8, %s1390_s30 }
  0x14   : > { %p1236_p2 = por %p1235_p1, %p1234_p0 }
  0x15   : > { %p1232_p13 = pneg %p1231_p12 }
  0x16   : > { %p1238_p4 = por %p1237_p3, %p1236_p2 }
  0x18   : > { %p1239_p5 = pnand %p1238_p4, %p1232_p13 }
  0x1a   : > { %1242 = shalt.err (!%p1239_p5)
}
  0x1b   : > { %s1243_s20 = scalar_lea.vmem %s1398_s5, 2048  ;;  %s1310_s21 = smov [#allocation2]  }
  0x1c   : > { %p1244_p6 = scmp.ne.s32.totalorder %s1398_s5, %s1243_s20  ;;  %s1248_s22 = sshll.u32 %s1310_s21, 4  ;;  %s1249_s22 = int_to_ptr.vmem [resolvable:$false] %s1248_s22 }
  0x1d   : > { %s1250_s25 = scalar_lea.vmem %s1249_s22, 4096  ;;  %p1251_p12 = scmp.lt.s32.totalorder %s1398_s5, %s1249_s22 }
  0x1e   : > { %p1246_p8 = pnand %p1244_p6, %p1230_p11  ;;  %p1252_p0 = scmp.lt.s32.totalorder %s1250_s25, %s1243_s20 }
  0x20   : > { %p1247_p10 = pneg %p1246_p8  ;;  %p1253_p1 = por %p1252_p0, %p1251_p12 }
  0x22   : > { %p1254_p2 = pnand %p1253_p1, %p1247_p10 }
  0x24   : > { %1257 = shalt.err (!%p1254_p2)
}
  0x25   : > { %s1311_s26 = smov 64   ;;  %s1312_s27 = smov 4  }
  0x26   : > { %1151 = dma.hbm_to_vmem [thread:$0]  (!%p1394_p9), %s1390_s30, 2048, %s1398_s5, %s1400_s7, %s1311_s26, %s1311_s26, %s1312_s27  }
  0x27   : > { %p1026_p11 = scmp.ge.s32.totalorder %s1308_s17, 1  ;;  %p201_p13 = scmp.lt.s32.totalorder %s1308_s17, 9 }
  0x29   : > { %p202_p3 = pnand %p1026_p11, %p201_p13 }
  0x2a   : > { %s207_s28 = sand.u32 (!%p202_p3), 1, %s1292_s13  }
  0x2b   : > { %205 = sbr.rel (%p202_p3) target bundleno = 339 (0x153), region = 32  ;;  %s1027_s29 = sshll.u32 (!%p202_p3), %s207_s28, 7 }
  0x2c   : > { %s208_s4 = scalar_lea.sflag (!%p202_p3), [#allocation3], %s207_s28  ;;  %s1431_s8 = scalar_lea.vmem (!%p202_p3), [#allocation2], %s1027_s29 }
  0x32   : > { %1283 = dma.done.wait (%p1377_p7), %s208_s4, 2048  }
  0x33   : > { %1285 = vsyncadd (%p1377_p7), %s208_s4, 4294965248  ;;  %s1028_s9 = sshll.u32 %s1300_s15, 5  ;;  %vm275_vm0 = vcmask 523264   ;;  %v1204_v0 = vld [vmem:[%s1795_s1] sm:$0xff]   ;;  %v1313_v1 = vmov 0.0   ;;  %v1205_v2 = vld [vmem:[%s1795_s1 + $0x8] sm:$0xff]  }
  0x34   : > { %p262_p4 = scmp.lt.s32.totalorder %s1028_s9, 255  ;;  %1082 = vmatprep.subr.bf16.mxu0 %v1204_v0  ;;  %1130 = vmatprep.subr.bf16.mxu1 %v1204_v0  ;;  %v1206_v3 = vld [vmem:[%s1795_s1 + $0x10] sm:$0xff]   ;;  %v1207_v4 = vld [vmem:[%s1795_s1 + $0x18] sm:$0xff]   ;;  %v1212_v5 = vld [vmem:[%s1431_s8] sm:$0xff]  }
  0x35   : > { %1083 = vmatpush3.bf16.msra.mxu0 %v1204_v0  ;;  %1138 = vmatpush3.bf16.msra.mxu1 %v1204_v0  ;;  %v1213_v6 = vld [vmem:[%s1431_s8 + $0x40] sm:$0xff]   ;;  %v1209_v8 = vld [vmem:[%s1795_s1 + $0x28] sm:$0xff]   ;;  %v1210_v9 = vld [vmem:[%s1795_s1 + $0x30] sm:$0xff]  }
  0x36   : > { %s1809_s9 = smov (!%p262_p4, %s1028_s9), 255  ;;  %1084 = vmatprep.subr.bf16.mxu0 %v1205_v2  ;;  %1131 = vmatprep.subr.bf16.mxu1 %v1205_v2  ;;  %v1208_v7 = vld [vmem:[%s1795_s1 + $0x20] sm:$0xff]   ;;  %v1211_v10 = vld [vmem:[%s1795_s1 + $0x38] sm:$0xff]   ;;  %v1214_v11 = vld [vmem:[%s1431_s8 + $0x8] sm:$0xff]  }
  0x37   : > { %s1029_s30 = sshll.u32 %s1809_s9, 3  ;;  %1098 = vmatprep.mubr.bf16.mxu0 %v1212_v5  ;;  %1114 = vmatprep.mubr.bf16.mxu1 %v1213_v6  ;;  %v1215_v12 = vld [vmem:[%s1431_s8 + $0x48] sm:$0xff]   ;;  %v1216_v13 = vld [vmem:[%s1431_s8 + $0x10] sm:$0xff]   ;;  %v1218_v15 = vld [vmem:[%s1431_s8 + $0x18] sm:$0xff]  }
  0x38   : > { %s1441_s7 = scalar_lea.vmem %s1797_s3, %s1029_s30  ;;  %v1217_v14 = vld [vmem:[%s1431_s8 + $0x50] sm:$0xff]   ;;  %v1219_v16 = vld [vmem:[%s1431_s8 + $0x58] sm:$0xff]   ;;  %v1220_v17 = vld [vmem:[%s1431_s8 + $0x20] sm:$0xff]  }
  0x39   : > { %278 = vst.msk [vmem:[%s1441_s7 + $0x10] sm:$0xff] %vm275_vm0, %v1313_v1  ;;  %276 = vst.msk [vmem:[%s1441_s7] sm:$0xff] %vm275_vm0, %v1313_v1  ;;  %1085 = vmatpush3.bf16.msra.mxu0 %v1205_v2  ;;  %1139 = vmatpush3.bf16.msra.mxu1 %v1205_v2  ;;  %v1221_v18 = vld [vmem:[%s1431_s8 + $0x60] sm:$0xff]   ;;  %v1222_v19 = vld [vmem:[%s1431_s8 + $0x28] sm:$0xff]  }
  0x3a   : > { %277 = vst.msk [vmem:[%s1441_s7 + $0x8] sm:$0xff] %vm275_vm0, %v1313_v1  ;;  %279 = vst.msk [vmem:[%s1441_s7 + $0x18] sm:$0xff] %vm275_vm0, %v1313_v1  ;;  %1086 = vmatprep.subr.bf16.mxu0 %v1206_v3  ;;  %1132 = vmatprep.subr.bf16.mxu1 %v1206_v3  ;;  %v1223_v20 = vld [vmem:[%s1431_s8 + $0x68] sm:$0xff]   ;;  %v1224_v21 = vld [vmem:[%s1431_s8 + $0x30] sm:$0xff]  }
  0x3b   : > { %280 = vst.msk [vmem:[%s1441_s7 + $0x20] sm:$0xff] %vm275_vm0, %v1313_v1  ;;  %281 = vst.msk [vmem:[%s1441_s7 + $0x28] sm:$0xff] %vm275_vm0, %v1313_v1  ;;  %v1225_v22 = vld [vmem:[%s1431_s8 + $0x70] sm:$0xff]   ;;  %v1226_v23 = vld [vmem:[%s1431_s8 + $0x38] sm:$0xff]  }
  0x3c   : > { %282 = vst.msk [vmem:[%s1441_s7 + $0x30] sm:$0xff] %vm275_vm0, %v1313_v1  ;;  %283 = vst.msk [vmem:[%s1441_s7 + $0x38] sm:$0xff] %vm275_vm0, %v1313_v1  ;;  %v1227_v24 = vld [vmem:[%s1431_s8 + $0x78] sm:$0xff]   ;;  %v1578_v53 = vld [vmem:[%s1796_s2] ss:$0 sm:$0xff] }
  0x3d   : > { %284 = vst.msk [vmem:[%s1441_s7 + $0x40] sm:$0xff] %vm275_vm0, %v1313_v1  ;;  %285 = vst.msk [vmem:[%s1441_s7 + $0x48] sm:$0xff] %vm275_vm0, %v1313_v1  ;;  %1087 = vmatpush3.bf16.msra.mxu0 %v1206_v3  ;;  %1140 = vmatpush3.bf16.msra.mxu1 %v1206_v3 }
  0x3e   : > { %286 = vst.msk [vmem:[%s1441_s7 + $0x50] sm:$0xff] %vm275_vm0, %v1313_v1  ;;  %287 = vst.msk [vmem:[%s1441_s7 + $0x58] sm:$0xff] %vm275_vm0, %v1313_v1  ;;  %1088 = vmatprep.subr.bf16.mxu0 %v1207_v4  ;;  %1133 = vmatprep.subr.bf16.mxu1 %v1207_v4 }
  0x3f   : > { %288 = vst.msk [vmem:[%s1441_s7 + $0x60] sm:$0xff] %vm275_vm0, %v1313_v1  ;;  %289 = vst.msk [vmem:[%s1441_s7 + $0x68] sm:$0xff] %vm275_vm0, %v1313_v1 }
  0x40   : > { %290 = vst.msk [vmem:[%s1441_s7 + $0x70] sm:$0xff] %vm275_vm0, %v1313_v1  ;;  %291 = vst.msk [vmem:[%s1441_s7 + $0x78] sm:$0xff] %vm275_vm0, %v1313_v1  ;;  %v310_v25 = vld [vmem:[%s1441_s7 + $0x10] sm:$0xff]  ;;  %v308_v27 = vld [vmem:[%s1441_s7] sm:$0xff] }
  0x41   : > { %292 = vst.msk [vmem:[%s1441_s7 + $0x80] sm:$0xff] %vm275_vm0, %v1313_v1  ;;  %293 = vst.msk [vmem:[%s1441_s7 + $0x88] sm:$0xff] %vm275_vm0, %v1313_v1  ;;  %1089 = vmatpush3.bf16.msra.mxu0 %v1207_v4  ;;  %1141 = vmatpush3.bf16.msra.mxu1 %v1207_v4  ;;  %v311_v31 = vld [vmem:[%s1441_s7 + $0x18] sm:$0xff]  ;;  %v309_v37 = vld [vmem:[%s1441_s7 + $0x8] sm:$0xff] }
  0x42   : > { %294 = vst.msk [vmem:[%s1441_s7 + $0x90] sm:$0xff] %vm275_vm0, %v1313_v1  ;;  %295 = vst.msk [vmem:[%s1441_s7 + $0x98] sm:$0xff] %vm275_vm0, %v1313_v1  ;;  %1090 = vmatprep.subr.bf16.mxu0 %v1208_v7  ;;  %1134 = vmatprep.subr.bf16.mxu1 %v1208_v7  ;;  %v312_v51 = vld [vmem:[%s1441_s7 + $0x20] sm:$0xff]  ;;  %v313_v62 = vld [vmem:[%s1441_s7 + $0x28] sm:$0xff] }
  0x43   : > { %296 = vst.msk [vmem:[%s1441_s7 + $0xa0] sm:$0xff] %vm275_vm0, %v1313_v1  ;;  %297 = vst.msk [vmem:[%s1441_s7 + $0xa8] sm:$0xff] %vm275_vm0, %v1313_v1  ;;  %v314_v49 = vld [vmem:[%s1441_s7 + $0x30] sm:$0xff]  ;;  %v315_v56 = vld [vmem:[%s1441_s7 + $0x38] sm:$0xff] }
  0x44   : > { %298 = vst.msk [vmem:[%s1441_s7 + $0xb0] sm:$0xff] %vm275_vm0, %v1313_v1  ;;  %299 = vst.msk [vmem:[%s1441_s7 + $0xb8] sm:$0xff] %vm275_vm0, %v1313_v1 }
  0x45   : > { %300 = vst.msk [vmem:[%s1441_s7 + $0xc0] sm:$0xff] %vm275_vm0, %v1313_v1  ;;  %301 = vst.msk [vmem:[%s1441_s7 + $0xc8] sm:$0xff] %vm275_vm0, %v1313_v1  ;;  %1091 = vmatpush3.bf16.msra.mxu0 %v1208_v7  ;;  %1142 = vmatpush3.bf16.msra.mxu1 %v1208_v7 }
  0x46   : > { %302 = vst.msk [vmem:[%s1441_s7 + $0xd0] sm:$0xff] %vm275_vm0, %v1313_v1  ;;  %303 = vst.msk [vmem:[%s1441_s7 + $0xd8] sm:$0xff] %vm275_vm0, %v1313_v1  ;;  %1092 = vmatprep.subr.bf16.mxu0 %v1209_v8  ;;  %1135 = vmatprep.subr.bf16.mxu1 %v1209_v8 }
  0x47   : > { %304 = vst.msk [vmem:[%s1441_s7 + $0xe0] sm:$0xff] %vm275_vm0, %v1313_v1  ;;  %305 = vst.msk [vmem:[%s1441_s7 + $0xe8] sm:$0xff] %vm275_vm0, %v1313_v1 }
  0x48   : > { %306 = vst.msk [vmem:[%s1441_s7 + $0xf0] sm:$0xff] %vm275_vm0, %v1313_v1  ;;  %307 = vst.msk [vmem:[%s1441_s7 + $0xf8] sm:$0xff] %vm275_vm0, %v1313_v1  ;;  %v324_v28 = vld [vmem:[%s1441_s7 + $0x80] sm:$0xff]  ;;  %v325_v38 = vld [vmem:[%s1441_s7 + $0x88] sm:$0xff] }
  0x49   : > { %1093 = vmatpush3.bf16.msra.mxu0 %v1209_v8  ;;  %1143 = vmatpush3.bf16.msra.mxu1 %v1209_v8  ;;  %v326_v26 = vld [vmem:[%s1441_s7 + $0x90] sm:$0xff]  ;;  %v327_v32 = vld [vmem:[%s1441_s7 + $0x98] sm:$0xff] }
  0x4a   : > { %1094 = vmatprep.subr.bf16.mxu0 %v1210_v9  ;;  %1136 = vmatprep.subr.bf16.mxu1 %v1210_v9  ;;  %v328_v52 = vld [vmem:[%s1441_s7 + $0xa0] sm:$0xff]  ;;  %v329_v63 = vld [vmem:[%s1441_s7 + $0xa8] sm:$0xff] }
  0x4b   : > { %v330_v50 = vld [vmem:[%s1441_s7 + $0xb0] sm:$0xff]  ;;  %v331_v57 = vld [vmem:[%s1441_s7 + $0xb8] sm:$0xff] }
  0x4d   : > { %1095 = vmatpush3.bf16.msra.mxu0 %v1210_v9  ;;  %1144 = vmatpush3.bf16.msra.mxu1 %v1210_v9 }
  0x4e   : > { %1096 = vmatprep.subr.bf16.mxu0 %v1211_v10  ;;  %1137 = vmatprep.subr.bf16.mxu1 %v1211_v10 }
  0x51   : > { %1097 = vmatpush3.bf16.msra.mxu0 %v1211_v10  ;;  %1145 = vmatpush3.bf16.msra.mxu1 %v1211_v10 }
  0x54   : > { %1099 = vmatmul.mubr.bf16.vlgmr.msra.gmra.mrb[0].mxu0 %v1214_v11  ;;  %1115 = vmatmul.mubr.bf16.vlgmr.msra.gmra.mrb[0].mxu1 %v1215_v12 }
  0x55   : > { %1102 = vmatprep.mubr.bf16.mxu0 %v1216_v13  ;;  %1118 = vmatprep.mubr.bf16.mxu1 %v1217_v14 }
  0x5c   : > { %1103 = vmatmul.mubr.bf16.gmra.mrb[4].mxu0 %v1218_v15  ;;  %1119 = vmatmul.mubr.bf16.gmra.mrb[4].mxu1 %v1219_v16 }
  0x5d   : > { %1106 = vmatprep.mubr.bf16.mxu0 %v1220_v17  ;;  %1122 = vmatprep.mubr.bf16.mxu1 %v1221_v18 }
  0x64   : > { %1107 = vmatmul.mubr.bf16.gmra.mrb[8].mxu0 %v1222_v19  ;;  %1123 = vmatmul.mubr.bf16.gmra.mrb[8].mxu1 %v1223_v20 }
  0x65   : > { %1110 = vmatprep.mubr.bf16.mxu0 %v1224_v21  ;;  %1126 = vmatprep.mubr.bf16.mxu1 %v1225_v22 }
  0x6c   : > { %1111 = vmatmul.mubr.bf16.gmra.mrb[12].mxu0 %v1226_v23  ;;  %1127 = vmatmul.mubr.bf16.gmra.mrb[12].mxu1 %v1227_v24 }
 0x127   : > { %v1100_v29 = vpop.f32.mrb[0].mxu0  ;;  %v1116_v30 = vpop.f32.mrb[0].mxu1 }
 0x128   : > { %v695_v33 = vadd.f32 %v1100_v29, %v310_v25  ;;  %v711_v34 = vadd.f32 %v1116_v30, %v326_v26  ;;  %v566_v35 = vpop.f32.mrb[1].mxu0  ;;  %v630_v36 = vpop.f32.mrb[1].mxu1  ;;  %v318_v30 = vld [vmem:[%s1441_s7 + $0x50] sm:$0xff] }
 0x129   : > { %v693_v39 = vadd.f32 %v566_v35, %v308_v27  ;;  %v709_v40 = vadd.f32 %v630_v36, %v324_v28  ;;  %v1101_v41 = vpop.f32.mrb[2].mxu0  ;;  %v1117_v42 = vpop.f32.mrb[2].mxu1  ;;  %v332_v35 = vld [vmem:[%s1441_s7 + $0xc0] sm:$0xff] }
 0x12a   : > { %728 = vst.msk [vmem:[%s1441_s7 + $0x10] sm:$0xff] %vm275_vm0, %v695_v33  ;;  %744 = vst.msk [vmem:[%s1441_s7 + $0x90] sm:$0xff] %vm275_vm0, %v711_v34  ;;  %v696_v43 = vadd.f32 %v1101_v41, %v311_v31  ;;  %v712_v44 = vadd.f32 %v1117_v42, %v327_v32  ;;  %v569_v45 = vpop.f32.mrb[3].mxu0  ;;  %v633_v46 = vpop.f32.mrb[3].mxu1  ;;  %v334_v31 = vld [vmem:[%s1441_s7 + $0xd0] sm:$0xff]  ;;  %v316_v34 = vld [vmem:[%s1441_s7 + $0x40] sm:$0xff] }
 0x12b   : > { %726 = vst.msk [vmem:[%s1441_s7] sm:$0xff] %vm275_vm0, %v693_v39  ;;  %742 = vst.msk [vmem:[%s1441_s7 + $0x80] sm:$0xff] %vm275_vm0, %v709_v40  ;;  %v694_v47 = vadd.f32 %v569_v45, %v309_v37  ;;  %v710_v48 = vadd.f32 %v633_v46, %v325_v38  ;;  %v319_v40 = vld [vmem:[%s1441_s7 + $0x58] sm:$0xff]  ;;  %v317_v46 = vld [vmem:[%s1441_s7 + $0x48] sm:$0xff] }
 0x12c   : > { %729 = vst.msk [vmem:[%s1441_s7 + $0x18] sm:$0xff] %vm275_vm0, %v696_v43  ;;  %745 = vst.msk [vmem:[%s1441_s7 + $0x98] sm:$0xff] %vm275_vm0, %v712_v44  ;;  %v335_v41 = vld [vmem:[%s1441_s7 + $0xd8] sm:$0xff] }
 0x12d   : > { %727 = vst.msk [vmem:[%s1441_s7 + $0x8] sm:$0xff] %vm275_vm0, %v694_v47  ;;  %743 = vst.msk [vmem:[%s1441_s7 + $0x88] sm:$0xff] %vm275_vm0, %v710_v48  ;;  %v333_v47 = vld [vmem:[%s1441_s7 + $0xc8] sm:$0xff] }
 0x12f   : > { %v1104_v54 = vpop.f32.mrb[4].mxu0  ;;  %v1120_v55 = vpop.f32.mrb[4].mxu1 }
 0x130   : > { %v699_v58 = vadd.f32 %v1104_v54, %v314_v49  ;;  %v715_v59 = vadd.f32 %v1120_v55, %v330_v50  ;;  %v582_v60 = vpop.f32.mrb[5].mxu0  ;;  %v646_v61 = vpop.f32.mrb[5].mxu1 }
 0x131   : > { %v763_v0 = vld [vmem:[%s1441_s7 + $0x10] sm:$0xff]  ;;  %v697_v2 = vadd.f32 %v582_v60, %v312_v51  ;;  %v713_v3 = vadd.f32 %v646_v61, %v328_v52  ;;  %v1105_v4 = vpop.f32.mrb[6].mxu0  ;;  %v1121_v5 = vpop.f32.mrb[6].mxu1 }
 0x132   : > { %v779_v1 = vld [vmem:[%s1441_s7 + $0x90] sm:$0xff]  ;;  %v802_v6 = vadd.f32 %v1578_v53, %v763_v0  ;;  %v761_v8 = vld [vmem:[%s1441_s7] sm:$0xff]  ;;  %732 = vst.msk [vmem:[%s1441_s7 + $0x30] sm:$0xff] %vm275_vm0, %v699_v58  ;;  %748 = vst.msk [vmem:[%s1441_s7 + $0xb0] sm:$0xff] %vm275_vm0, %v715_v59  ;;  %v700_v10 = vadd.f32 %v1105_v4, %v315_v56  ;;  %v716_v11 = vadd.f32 %v1121_v5, %v331_v57  ;;  %v585_v12 = vpop.f32.mrb[7].mxu0  ;;  %v649_v13 = vpop.f32.mrb[7].mxu1 }
 0x133   : > { %v818_v7 = vadd.f32 %v1578_v53, %v779_v1  ;;  %v777_v9 = vld [vmem:[%s1441_s7 + $0x80] sm:$0xff]  ;;  %v800_v14 = vadd.f32 %v1578_v53, %v761_v8  ;;  %v764_v16 = vld [vmem:[%s1441_s7 + $0x18] sm:$0xff]  ;;  %730 = vst.msk [vmem:[%s1441_s7 + $0x20] sm:$0xff] %vm275_vm0, %v697_v2  ;;  %746 = vst.msk [vmem:[%s1441_s7 + $0xa0] sm:$0xff] %vm275_vm0, %v713_v3  ;;  %v698_v18 = vadd.f32 %v585_v12, %v313_v62 }
 0x134   : > { %v816_v15 = vadd.f32 %v1578_v53, %v777_v9  ;;  %v780_v17 = vld [vmem:[%s1441_s7 + $0x98] sm:$0xff]  ;;  %v714_v19 = vadd.f32 %v649_v13, %v329_v63  ;;  %v834_v20 = vmax.f32 %v802_v6, 0.0  ;;  %v803_v22 = vadd.f32 %v1578_v53, %v764_v16  ;;  %v762_v24 = vld [vmem:[%s1441_s7 + $0x8] sm:$0xff]  ;;  %733 = vst.msk [vmem:[%s1441_s7 + $0x38] sm:$0xff] %vm275_vm0, %v700_v10  ;;  %749 = vst.msk [vmem:[%s1441_s7 + $0xb8] sm:$0xff] %vm275_vm0, %v716_v11 }
 0x135   : > { %v850_v21 = vmax.f32 %v818_v7, 0.0  ;;  %v819_v23 = vadd.f32 %v1578_v53, %v780_v17  ;;  %v778_v25 = vld [vmem:[%s1441_s7 + $0x88] sm:$0xff]  ;;  %v832_v26 = vmax.f32 %v800_v14, 0.0  ;;  %v801_v28 = vadd.f32 %v1578_v53, %v762_v24  ;;  %731 = vst.msk [vmem:[%s1441_s7 + $0x28] sm:$0xff] %vm275_vm0, %v698_v18  ;;  %v338_v16 = vld [vmem:[%s1441_s7 + $0xf0] sm:$0xff] }
 0x136   : > { %v848_v27 = vmax.f32 %v816_v15, 0.0  ;;  %v817_v29 = vadd.f32 %v1578_v53, %v778_v25  ;;  %747 = vst.msk [vmem:[%s1441_s7 + $0xa8] sm:$0xff] %vm275_vm0, %v714_v19  ;;  %866 = vst.msk [vmem:[%s1441_s7 + $0x10] sm:$0xff] %vm275_vm0, %v834_v20  ;;  %v835_v32 = vmax.f32 %v803_v22, 0.0  ;;  %v322_v15 = vld [vmem:[%s1441_s7 + $0x70] sm:$0xff]  ;;  %v320_v19 = vld [vmem:[%s1441_s7 + $0x60] sm:$0xff] }
 0x137   : > { %882 = vst.msk [vmem:[%s1441_s7 + $0x90] sm:$0xff] %vm275_vm0, %v850_v21  ;;  %v851_v33 = vmax.f32 %v819_v23, 0.0  ;;  %864 = vst.msk [vmem:[%s1441_s7] sm:$0xff] %vm275_vm0, %v832_v26  ;;  %v833_v36 = vmax.f32 %v801_v28, 0.0  ;;  %v1108_v38 = vpop.f32.mrb[8].mxu0  ;;  %v1124_v39 = vpop.f32.mrb[8].mxu1 }
 0x138   : > { %880 = vst.msk [vmem:[%s1441_s7 + $0x80] sm:$0xff] %vm275_vm0, %v848_v27  ;;  %v849_v37 = vmax.f32 %v817_v29, 0.0  ;;  %867 = vst.msk [vmem:[%s1441_s7 + $0x18] sm:$0xff] %vm275_vm0, %v835_v32  ;;  %v703_v42 = vadd.f32 %v1108_v38, %v318_v30  ;;  %v719_v43 = vadd.f32 %v1124_v39, %v334_v31  ;;  %v598_v44 = vpop.f32.mrb[9].mxu0  ;;  %v662_v45 = vpop.f32.mrb[9].mxu1  ;;  %v336_v20 = vld [vmem:[%s1441_s7 + $0xe0] sm:$0xff] }
 0x139   : > { %883 = vst.msk [vmem:[%s1441_s7 + $0x98] sm:$0xff] %vm275_vm0, %v851_v33  ;;  %865 = vst.msk [vmem:[%s1441_s7 + $0x8] sm:$0xff] %vm275_vm0, %v833_v36  ;;  %v767_v48 = vld [vmem:[%s1441_s7 + $0x30] sm:$0xff]  ;;  %v701_v50 = vadd.f32 %v598_v44, %v316_v34  ;;  %v717_v51 = vadd.f32 %v662_v45, %v332_v35  ;;  %v1109_v52 = vpop.f32.mrb[10].mxu0  ;;  %v1125_v54 = vpop.f32.mrb[10].mxu1  ;;  %v323_v25 = vld [vmem:[%s1441_s7 + $0x78] sm:$0xff] }
 0x13a   : > { %881 = vst.msk [vmem:[%s1441_s7 + $0x88] sm:$0xff] %vm275_vm0, %v849_v37  ;;  %v783_v49 = vld [vmem:[%s1441_s7 + $0xb0] sm:$0xff]  ;;  %v806_v55 = vadd.f32 %v1578_v53, %v767_v48  ;;  %v765_v57 = vld [vmem:[%s1441_s7 + $0x20] sm:$0xff]  ;;  %736 = vst.msk [vmem:[%s1441_s7 + $0x50] sm:$0xff] %vm275_vm0, %v703_v42  ;;  %v704_v59 = vadd.f32 %v1109_v52, %v319_v40  ;;  %v720_v60 = vadd.f32 %v1125_v54, %v335_v41  ;;  %v601_v61 = vpop.f32.mrb[11].mxu0  ;;  %v665_v62 = vpop.f32.mrb[11].mxu1 }
 0x13b   : > { %v822_v56 = vadd.f32 %v1578_v53, %v783_v49  ;;  %v781_v58 = vld [vmem:[%s1441_s7 + $0xa0] sm:$0xff]  ;;  %752 = vst.msk [vmem:[%s1441_s7 + $0xd0] sm:$0xff] %vm275_vm0, %v719_v43  ;;  %v804_v63 = vadd.f32 %v1578_v53, %v765_v57  ;;  %v768_v1 = vld [vmem:[%s1441_s7 + $0x38] sm:$0xff]  ;;  %734 = vst.msk [vmem:[%s1441_s7 + $0x40] sm:$0xff] %vm275_vm0, %v701_v50  ;;  %v702_v3 = vadd.f32 %v601_v61, %v317_v46 }
 0x13c   : > { %v820_v0 = vadd.f32 %v1578_v53, %v781_v58  ;;  %v784_v2 = vld [vmem:[%s1441_s7 + $0xb8] sm:$0xff]  ;;  %750 = vst.msk [vmem:[%s1441_s7 + $0xc0] sm:$0xff] %vm275_vm0, %v717_v51  ;;  %v718_v4 = vadd.f32 %v665_v62, %v333_v47  ;;  %v838_v5 = vmax.f32 %v806_v55, 0.0  ;;  %v807_v7 = vadd.f32 %v1578_v53, %v768_v1  ;;  %v766_v9 = vld [vmem:[%s1441_s7 + $0x28] sm:$0xff]  ;;  %737 = vst.msk [vmem:[%s1441_s7 + $0x58] sm:$0xff] %vm275_vm0, %v704_v59 }
 0x13d   : > { %v854_v6 = vmax.f32 %v822_v56, 0.0  ;;  %v823_v8 = vadd.f32 %v1578_v53, %v784_v2  ;;  %v782_v10 = vld [vmem:[%s1441_s7 + $0xa8] sm:$0xff]  ;;  %753 = vst.msk [vmem:[%s1441_s7 + $0xd8] sm:$0xff] %vm275_vm0, %v720_v60  ;;  %v836_v11 = vmax.f32 %v804_v63, 0.0  ;;  %v805_v13 = vadd.f32 %v1578_v53, %v766_v9  ;;  %735 = vst.msk [vmem:[%s1441_s7 + $0x48] sm:$0xff] %vm275_vm0, %v702_v3  ;;  %v339_v26 = vld [vmem:[%s1441_s7 + $0xf8] sm:$0xff] }
 0x13e   : > { %v852_v12 = vmax.f32 %v820_v0, 0.0  ;;  %v821_v14 = vadd.f32 %v1578_v53, %v782_v10  ;;  %751 = vst.msk [vmem:[%s1441_s7 + $0xc8] sm:$0xff] %vm275_vm0, %v718_v4  ;;  %870 = vst.msk [vmem:[%s1441_s7 + $0x30] sm:$0xff] %vm275_vm0, %v838_v5  ;;  %v839_v17 = vmax.f32 %v807_v7, 0.0  ;;  %v321_v31 = vld [vmem:[%s1441_s7 + $0x68] sm:$0xff] }
 0x13f   : > { %886 = vst.msk [vmem:[%s1441_s7 + $0xb0] sm:$0xff] %vm275_vm0, %v854_v6  ;;  %v855_v18 = vmax.f32 %v823_v8, 0.0  ;;  %868 = vst.msk [vmem:[%s1441_s7 + $0x20] sm:$0xff] %vm275_vm0, %v836_v11  ;;  %v837_v21 = vmax.f32 %v805_v13, 0.0  ;;  %v1112_v23 = vpop.f32.mrb[12].mxu0  ;;  %v1128_v24 = vpop.f32.mrb[12].mxu1 }
 0x140   : > { %884 = vst.msk [vmem:[%s1441_s7 + $0xa0] sm:$0xff] %vm275_vm0, %v852_v12  ;;  %v853_v22 = vmax.f32 %v821_v14, 0.0  ;;  %871 = vst.msk [vmem:[%s1441_s7 + $0x38] sm:$0xff] %vm275_vm0, %v839_v17  ;;  %v707_v27 = vadd.f32 %v1112_v23, %v322_v15  ;;  %v723_v28 = vadd.f32 %v1128_v24, %v338_v16  ;;  %v614_v29 = vpop.f32.mrb[13].mxu0  ;;  %v678_v30 = vpop.f32.mrb[13].mxu1  ;;  %v337_v32 = vld [vmem:[%s1441_s7 + $0xe8] sm:$0xff] }
 0x141   : > { %887 = vst.msk [vmem:[%s1441_s7 + $0xb8] sm:$0xff] %vm275_vm0, %v855_v18  ;;  %869 = vst.msk [vmem:[%s1441_s7 + $0x28] sm:$0xff] %vm275_vm0, %v837_v21  ;;  %v771_v33 = vld [vmem:[%s1441_s7 + $0x50] sm:$0xff]  ;;  %v705_v35 = vadd.f32 %v614_v29, %v320_v19  ;;  %v721_v36 = vadd.f32 %v678_v30, %v336_v20  ;;  %v1113_v37 = vpop.f32.mrb[14].mxu0  ;;  %v1129_v38 = vpop.f32.mrb[14].mxu1 }
 0x142   : > { %885 = vst.msk [vmem:[%s1441_s7 + $0xa8] sm:$0xff] %vm275_vm0, %v853_v22  ;;  %v787_v34 = vld [vmem:[%s1441_s7 + $0xd0] sm:$0xff]  ;;  %v810_v39 = vadd.f32 %v1578_v53, %v771_v33  ;;  %v769_v41 = vld [vmem:[%s1441_s7 + $0x40] sm:$0xff]  ;;  %740 = vst.msk [vmem:[%s1441_s7 + $0x70] sm:$0xff] %vm275_vm0, %v707_v27  ;;  %v708_v43 = vadd.f32 %v1113_v37, %v323_v25  ;;  %v724_v44 = vadd.f32 %v1129_v38, %v339_v26  ;;  %v617_v45 = vpop.f32.mrb[15].mxu0  ;;  %v681_v46 = vpop.f32.mrb[15].mxu1 }
 0x143   : > { %v826_v40 = vadd.f32 %v1578_v53, %v787_v34  ;;  %v785_v42 = vld [vmem:[%s1441_s7 + $0xc0] sm:$0xff]  ;;  %756 = vst.msk [vmem:[%s1441_s7 + $0xf0] sm:$0xff] %vm275_vm0, %v723_v28  ;;  %v808_v47 = vadd.f32 %v1578_v53, %v769_v41  ;;  %v772_v49 = vld [vmem:[%s1441_s7 + $0x58] sm:$0xff]  ;;  %738 = vst.msk [vmem:[%s1441_s7 + $0x60] sm:$0xff] %vm275_vm0, %v705_v35  ;;  %v706_v51 = vadd.f32 %v617_v45, %v321_v31 }
 0x144   : > { %v824_v48 = vadd.f32 %v1578_v53, %v785_v42  ;;  %v788_v50 = vld [vmem:[%s1441_s7 + $0xd8] sm:$0xff]  ;;  %754 = vst.msk [vmem:[%s1441_s7 + $0xe0] sm:$0xff] %vm275_vm0, %v721_v36  ;;  %v722_v52 = vadd.f32 %v681_v46, %v337_v32  ;;  %v842_v54 = vmax.f32 %v810_v39, 0.0  ;;  %v811_v56 = vadd.f32 %v1578_v53, %v772_v49  ;;  %v770_v58 = vld [vmem:[%s1441_s7 + $0x48] sm:$0xff]  ;;  %741 = vst.msk [vmem:[%s1441_s7 + $0x78] sm:$0xff] %vm275_vm0, %v708_v43 }
 0x145   : > { %v858_v55 = vmax.f32 %v826_v40, 0.0  ;;  %v827_v57 = vadd.f32 %v1578_v53, %v788_v50  ;;  %v786_v59 = vld [vmem:[%s1441_s7 + $0xc8] sm:$0xff]  ;;  %757 = vst.msk [vmem:[%s1441_s7 + $0xf8] sm:$0xff] %vm275_vm0, %v724_v44  ;;  %v840_v60 = vmax.f32 %v808_v47, 0.0  ;;  %v809_v62 = vadd.f32 %v1578_v53, %v770_v58  ;;  %739 = vst.msk [vmem:[%s1441_s7 + $0x68] sm:$0xff] %vm275_vm0, %v706_v51 }
 0x146   : > { %v856_v61 = vmax.f32 %v824_v48, 0.0  ;;  %v825_v63 = vadd.f32 %v1578_v53, %v786_v59  ;;  %755 = vst.msk [vmem:[%s1441_s7 + $0xe8] sm:$0xff] %vm275_vm0, %v722_v52  ;;  %874 = vst.msk [vmem:[%s1441_s7 + $0x50] sm:$0xff] %vm275_vm0, %v842_v54  ;;  %v843_v0 = vmax.f32 %v811_v56, 0.0 }
 0x147   : > { %890 = vst.msk [vmem:[%s1441_s7 + $0xd0] sm:$0xff] %vm275_vm0, %v858_v55  ;;  %v859_v1 = vmax.f32 %v827_v57, 0.0  ;;  %872 = vst.msk [vmem:[%s1441_s7 + $0x40] sm:$0xff] %vm275_vm0, %v840_v60  ;;  %v841_v2 = vmax.f32 %v809_v62, 0.0 }
 0x148   : > { %888 = vst.msk [vmem:[%s1441_s7 + $0xc0] sm:$0xff] %vm275_vm0, %v856_v61  ;;  %v857_v3 = vmax.f32 %v825_v63, 0.0  ;;  %875 = vst.msk [vmem:[%s1441_s7 + $0x58] sm:$0xff] %vm275_vm0, %v843_v0 }
 0x149   : > { %891 = vst.msk [vmem:[%s1441_s7 + $0xd8] sm:$0xff] %vm275_vm0, %v859_v1  ;;  %873 = vst.msk [vmem:[%s1441_s7 + $0x48] sm:$0xff] %vm275_vm0, %v841_v2  ;;  %v775_v4 = vld [vmem:[%s1441_s7 + $0x70] sm:$0xff] }
 0x14a   : > { %889 = vst.msk [vmem:[%s1441_s7 + $0xc8] sm:$0xff] %vm275_vm0, %v857_v3  ;;  %v791_v5 = vld [vmem:[%s1441_s7 + $0xf0] sm:$0xff]  ;;  %v814_v6 = vadd.f32 %v1578_v53, %v775_v4  ;;  %v773_v8 = vld [vmem:[%s1441_s7 + $0x60] sm:$0xff] }
 0x14b   : > { %v830_v7 = vadd.f32 %v1578_v53, %v791_v5  ;;  %v789_v9 = vld [vmem:[%s1441_s7 + $0xe0] sm:$0xff]  ;;  %v812_v10 = vadd.f32 %v1578_v53, %v773_v8  ;;  %v776_v12 = vld [vmem:[%s1441_s7 + $0x78] sm:$0xff] }
 0x14c   : > { %v828_v11 = vadd.f32 %v1578_v53, %v789_v9  ;;  %v792_v13 = vld [vmem:[%s1441_s7 + $0xf8] sm:$0xff]  ;;  %v846_v14 = vmax.f32 %v814_v6, 0.0  ;;  %v815_v16 = vadd.f32 %v1578_v53, %v776_v12  ;;  %v774_v18 = vld [vmem:[%s1441_s7 + $0x68] sm:$0xff] }
 0x14d   : > { %v862_v15 = vmax.f32 %v830_v7, 0.0  ;;  %v831_v17 = vadd.f32 %v1578_v53, %v792_v13  ;;  %v790_v19 = vld [vmem:[%s1441_s7 + $0xe8] sm:$0xff]  ;;  %v844_v20 = vmax.f32 %v812_v10, 0.0  ;;  %v813_v22 = vadd.f32 %v1578_v53, %v774_v18 }
 0x14e   : > { %v860_v21 = vmax.f32 %v828_v11, 0.0  ;;  %v829_v23 = vadd.f32 %v1578_v53, %v790_v19  ;;  %878 = vst.msk [vmem:[%s1441_s7 + $0x70] sm:$0xff] %vm275_vm0, %v846_v14  ;;  %v847_v24 = vmax.f32 %v815_v16, 0.0 }
 0x14f   : > { %894 = vst.msk [vmem:[%s1441_s7 + $0xf0] sm:$0xff] %vm275_vm0, %v862_v15  ;;  %v863_v25 = vmax.f32 %v831_v17, 0.0  ;;  %876 = vst.msk [vmem:[%s1441_s7 + $0x60] sm:$0xff] %vm275_vm0, %v844_v20  ;;  %v845_v26 = vmax.f32 %v813_v22, 0.0 }
 0x150   : > { %892 = vst.msk [vmem:[%s1441_s7 + $0xe0] sm:$0xff] %vm275_vm0, %v860_v21  ;;  %v861_v27 = vmax.f32 %v829_v23, 0.0  ;;  %879 = vst.msk [vmem:[%s1441_s7 + $0x78] sm:$0xff] %vm275_vm0, %v847_v24 }
 0x151   : > { %895 = vst.msk [vmem:[%s1441_s7 + $0xf8] sm:$0xff] %vm275_vm0, %v863_v25  ;;  %877 = vst.msk [vmem:[%s1441_s7 + $0x68] sm:$0xff] %vm275_vm0, %v845_v26 }
 0x152   : > { %893 = vst.msk [vmem:[%s1441_s7 + $0xe8] sm:$0xff] %vm275_vm0, %v861_v27 }
 0x153 PF: > { %s16_s17 = sadd.s32 1, %s1308_s17   ;;  %s1801_s12 = smov %s1292_s13 }
 0x154   : > { %p13_p7 = scmp.ge.s32.totalorder %s16_s17, 10   ;;  %s1802_s13 = smov %s1296_s14 }
 0x155   : > { %s1803_s14 = smov %s1383_s24  ;;  %s1804_s15 = smov %s1304_s16 }
 0x156   : > { %s1805_s16 = smov %s1807_s19  ;;  %15 = sbr.rel (!%p13_p7) target bundleno = 4 (0x4), region = 86 }
 0x15d   :  { %924 = vsyncpa [#allocation3], 1 }
 0x15e   :  { %926 = vsyncpa [#allocation3 + $0x1], 1 }

</bundles_post_ra>
